<compile_context>
chip_gen: v7x
topology: tpu7x:2x2x1
jax: 0.10.0
libtpu: 0.0.40
codegen_flags: <defaults>
</compile_context>

<pallas_src>
import functools

import jax
import jax.numpy as jnp
from jax.experimental import pallas as pl
from jax.experimental.pallas import tpu as pltpu

LANE = 128      # lane width (last dim)
SUBLANE = 8     # sublane width (second-to-last dim)


def _round_up(x, m):
    return ((x + m - 1) // m) * m


def fc_kernel(x_ref, w_ref, b_ref, o_ref):
    # x_ref: [tm, K] f32, w_ref: [K, N_pad] bf16, b_ref: [1, N_pad] f32
    # o_ref: [tm, N_pad] f32
    x_bf16 = x_ref[...].astype(jnp.bfloat16)           # cast in-kernel (VPU slack)
    acc = jnp.dot(x_bf16, w_ref[...], preferred_element_type=jnp.float32)
    o_ref[...] = acc + b_ref[...]


def prepare_fc_params(weight, bias):
    """One-time parameter layout prep (done at init, not per forward call).

    weight: [num_class, K] float32  (PyTorch nn.Linear layout)
    bias:   [num_class]   float32
    returns (w_kn [K, N_pad] bf16, b2d [1, N_pad] f32), N_pad = ceil(N/128)*128
    """
    num_class, K = weight.shape
    n_pad = _round_up(num_class, LANE)
    w_kn = jnp.zeros((K, n_pad), jnp.bfloat16)
    w_kn = w_kn.at[:, :num_class].set(weight.T.astype(jnp.bfloat16))
    b2d = jnp.zeros((1, n_pad), jnp.float32)
    b2d = b2d.at[:, :num_class].set(bias.astype(jnp.float32))
    return w_kn, b2d


def _pick_tm(B, K, n_pad):
    """Batch tile: 8-aligned, large for roofline, >=2 grid steps when possible,
    bounded so double-buffered tiles + resident weight fit comfortably in VMEM."""
    b8 = _round_up(B, SUBLANE)
    tm = min(1024, b8)
    # Ensure >= 2 grid steps when B allows it -> both v7x TensorCores get work.
    if b8 >= 2 * SUBLANE:
        tm = min(tm, _round_up((b8 + 1) // 2, SUBLANE))

    def vmem_bytes(t):
        # 2x buffered f32 x tile + 2x buffered f32 out tile + resident w/bias
        return 2 * t * K * 4 + 2 * t * n_pad * 4 + K * n_pad * 2 + n_pad * 4

    budget = 24 * 1024 * 1024   # stay under v7x's 32 MiB scoped default
    while tm > SUBLANE and vmem_bytes(tm) > budget:
        tm = max(SUBLANE, _round_up(tm // 2, SUBLANE))
    return tm


@functools.partial(jax.jit, static_argnames=("num_class",))
def net_forward(x_nchw, w_kn, b2d, *, num_class):
    """Pallas implementation of Net.forward (flatten + fc head).

    x_nchw : [B, C, H, W] float32 backbone output (C*H*W == 2048)
    w_kn   : [K, N_pad] bfloat16 pre-laid-out weight (from prepare_fc_params)
    b2d    : [1, N_pad] float32 pre-padded bias
    returns: [B, num_class] float32
    """
    B = x_nchw.shape[0]
    K = x_nchw.shape[1] * x_nchw.shape[2] * x_nchw.shape[3]
    n_pad = w_kn.shape[1]

    # torch.flatten(x, start_dim=1): free metadata reshape, stays f32.
    feat = x_nchw.reshape(B, K)

    # Tiny-batch fast path: pallas_call dispatch would dominate wall time.
    if B <= SUBLANE:
        acc = jnp.dot(feat.astype(jnp.bfloat16), w_kn,
                      preferred_element_type=jnp.float32)
        return (acc + b2d)[:, :num_class]

    tm = _pick_tm(B, K, n_pad)
    grid = (pl.cdiv(B, tm),)   # final partial block masked by Pallas

    cost = pl.CostEstimate(
        flops=2 * B * K * n_pad,
        transcendentals=0,
        bytes_accessed=B * K * 4 + K * n_pad * 2 + n_pad * 4 + B * n_pad * 4,
    )

    out_pad = pl.pallas_call(
        fc_kernel,
        out_shape=jax.ShapeDtypeStruct((B, n_pad), jnp.float32),
        grid=grid,
        in_specs=[
            pl.BlockSpec((tm, K), lambda i: (i, 0)),       # activations: batch-tiled
            pl.BlockSpec((K, n_pad), lambda i: (0, 0)),    # weight: resident
            pl.BlockSpec((1, n_pad), lambda i: (0, 0)),    # bias: resident
        ],
        out_specs=pl.BlockSpec((tm, n_pad), lambda i: (i, 0)),
        compiler_params=pltpu.CompilerParams(
            dimension_semantics=("parallel",)),            # megacore sharding on v7x
        cost_estimate=cost,
    )(feat, w_kn, b2d)

    # Drop the lane-padding columns (zero weight/bias there -> exact zeros).
    return out_pad[:, :num_class]


if __name__ == "__main__":
    key = jax.random.PRNGKey(0)
    num_class = 10
    kx, kw, kb = jax.random.split(key, 3)

    # nn.Linear(2048, num_class) parameters, deterministic init
    weight = jax.random.normal(kw, (num_class, 2048), dtype=jnp.float32) * 0.02
    bias = jax.random.normal(kb, (num_class,), dtype=jnp.float32) * 0.02
    # One-time layout prep (equivalent of storing the weight in [K, N_pad] bf16)
    w_kn, b2d = prepare_fc_params(weight, bias)

    # --- Pallas tiled path: B=19 -> 2 grid steps + masked partial last block ---
    B = 19
    x = jax.random.normal(kx, (B, 2048, 1, 1), dtype=jnp.float32)
    out = jax.block_until_ready(net_forward(x, w_kn, b2d, num_class=num_class))
    ref = x.reshape(B, -1) @ weight.T + bias
    assert out.shape == (B, num_class)
    assert jnp.allclose(out, ref, atol=3e-2, rtol=3e-2), float(
        jnp.max(jnp.abs(out - ref)))

    # --- Tiny-batch fallback path (demo-size B=2) ---
    x2 = jax.random.normal(kx, (2, 2048, 1, 1), dtype=jnp.float32)
    out2 = jax.block_until_ready(net_forward(x2, w_kn, b2d, num_class=num_class))
    ref2 = x2.reshape(2, -1) @ weight.T + bias
    assert out2.shape == (2, num_class)
    assert jnp.allclose(out2, ref2, atol=3e-2, rtol=3e-2), float(
        jnp.max(jnp.abs(out2 - ref2)))

    print("KERNEL_OK")
</pallas_src>

<mosaic_0001>
module attributes {stable_mosaic.version = 11 : i64} {
  func.func @fc_kernel(%arg0: i32, %arg1: memref<16x2048xf32, #tpu.memory_space<vmem>>, %arg2: memref<2048x128xbf16, #tpu.memory_space<vmem>>, %arg3: memref<1x128xf32, #tpu.memory_space<vmem>>, %arg4: memref<16x128xf32, #tpu.memory_space<vmem>>) attributes {dimension_semantics = [#tpu.dimension_semantics<parallel>], iteration_bounds = array<i64: 2>, scalar_prefetch = 0 : i64, scratch_operands = 0 : i64, tpu.core_type = #tpu.core_type<tc>, window_params = [{transform_indices = @transform_0, window_bounds = array<i64: 16, 2048>}, {pipeline_mode = #tpu.pipeline_mode<synchronous>, transform_indices = @transform_1, window_bounds = array<i64: 2048, 128>}, {pipeline_mode = #tpu.pipeline_mode<synchronous>, transform_indices = @transform_2, window_bounds = array<i64: 1, 128>}, {transform_indices = @transform_3, window_bounds = array<i64: 16, 128>}]} {
    %c0 = arith.constant 0 : index
    %c0_0 = arith.constant 0 : index
    %0 = vector.load %arg1[%c0, %c0_0] : memref<16x2048xf32, #tpu.memory_space<vmem>>, vector<16x2048xf32>
    %1 = arith.truncf %0 : vector<16x2048xf32> to vector<16x2048xbf16>
    %c0_1 = arith.constant 0 : index
    %c0_2 = arith.constant 0 : index
    %2 = vector.load %arg2[%c0_1, %c0_2] : memref<2048x128xbf16, #tpu.memory_space<vmem>>, vector<2048x128xbf16>
    %cst = arith.constant dense<0.000000e+00> : vector<16x128xf32>
    %3 = tpu.matmul %1, %2, %cst {dimension_numbers = #tpu.dot_dimension_numbers<[1], [0], [0], [1], [0, 0, 1, 1], [], []>} : vector<16x2048xbf16>, vector<2048x128xbf16>, vector<16x128xf32> -> vector<16x128xf32>
    %c0_3 = arith.constant 0 : index
    %c0_4 = arith.constant 0 : index
    %4 = vector.load %arg3[%c0_3, %c0_4] : memref<1x128xf32, #tpu.memory_space<vmem>>, vector<1x128xf32>
    %5 = vector.broadcast %4 : vector<1x128xf32> to vector<16x128xf32>
    %6 = arith.addf %3, %5 : vector<16x128xf32>
    %c0_5 = arith.constant 0 : index
    %c0_6 = arith.constant 0 : index
    %7 = vector.load %arg4[%c0_5, %c0_6] : memref<16x128xf32, #tpu.memory_space<vmem>>, vector<16x128xf32>
    tpu.vector_store %arg4[%c0_5, %c0_6], %6 {strides = array<i32>} : memref<16x128xf32, #tpu.memory_space<vmem>>, vector<16x128xf32>,
    return
  }
  func.func @transform_0(%arg0: i32) -> (i32, i32) {
    %c0_i32 = arith.constant 0 : i32
    %c0_i32_0 = arith.constant 0 : i32
    return %arg0, %c0_i32 : i32, i32
  }
  func.func @transform_1(%arg0: i32) -> (i32, i32) {
    %c0_i32 = arith.constant 0 : i32
    %c0_i32_0 = arith.constant 0 : i32
    %c0_i32_1 = arith.constant 0 : i32
    return %c0_i32, %c0_i32_0 : i32, i32
  }
  func.func @transform_2(%arg0: i32) -> (i32, i32) {
    %c0_i32 = arith.constant 0 : i32
    %c0_i32_0 = arith.constant 0 : i32
    %c0_i32_1 = arith.constant 0 : i32
    return %c0_i32, %c0_i32_0 : i32, i32
  }
  func.func @transform_3(%arg0: i32) -> (i32, i32) {
    %c0_i32 = arith.constant 0 : i32
    %c0_i32_0 = arith.constant 0 : i32
    return %arg0, %c0_i32 : i32, i32
  }
}

</mosaic_0001>

<bundles_post_ra>
// kernel: net_forward.1
= control target key start
LH: loop header
LB: loop body
LE: loop exit
PB: predicated region body
PF: predicated region fallthrough
CT: control target
= control target key end

     0   :  { %8 = vsyncpa [#allocation3], 0  ;;  %s2564_s12 = smov 0   ;;  %s2566_s13 = smov 0   ;;  %s2719_s0 = inlined_call_operand.vmem [shape: f32[19,2048], index: 0, kind: input, shape index: {}]   ;;  %s2720_s1 = inlined_call_operand.hbm [shape: bf16[2048,128], index: 1, kind: input, shape index: {}]   ;;  %s2721_s2 = inlined_call_operand.vmem [shape: f32[1,128], index: 2, kind: input, shape index: {}]   ;;  %s2722_s3 = inlined_call_operand.vmem [shape: f32[19,128], index: 3, kind: output, shape index: {}]  }
   0x1   :  { %s2568_s14 = smov 0  }
   0x2 LB: > { %s2577_s15 = sadd.s32 4294967295, %s2507_s14   ;;  %s2579_s16 = sadd.s32 1, %s2507_s14   ;;  %s2507_s14 = sphi %s2568_s14, %s2734_s14   ;;  %s2503_s13 = sphi %s2566_s13, %s2733_s13   ;;  %s2499_s12 = sphi %s2564_s12, %s2732_s12  }
   0x3   : > { %s86_s17 = ssub.s32 %s2507_s14, %s2579_s16  ;;  %s89_s18 = sadd.s32 1, %s2503_s13 }
   0x4   : > { %p87_p0 = scmp.eq.s32.totalorder %s86_s17, 0  ;;  %p99_p1 = scmp.ne.s32.totalorder %s2503_s13, %s2499_s12 }
   0x5   : > { %p100_p2 = scmp.eq.s32.totalorder %s2577_s15, 1  ;;  %p1857_p3 = scmp.ge.s32.totalorder %s2507_s14, 1 }
   0x6   : > { %s2587_s19 = scalar_select %p87_p0, %s2503_s13, %s89_s18  }
   0x7   : > { %p2589_p4 = por %p100_p2, %p99_p1  ;;  %p113_p5 = scmp.lt.s32.totalorder %s2507_s14, 3 }
   0x8   : > { %p2723_p6 = scmp.eq.s32.totalorder %s2577_s15, 0  ;;  %s2541_s22 = smov [#allocation2]  }
   0x9   : > { %s2725_s20 = scalar_select %p2589_p4, 1, 0 }
   0xa   : > { %p2594_p7 = pnand %p1857_p3, %p113_p5  ;;  %s125_s23 = sshll.u32 %s2541_s22, 4  ;;  %s126_s23 = int_to_ptr.vmem [resolvable:$true] %s125_s23 }
   0xb   : > { %s2421_s27 = scalar_lea.hbm %s2720_s1, 16384 }
   0xc   : > { %s2726_s21 = scalar_select %p2594_p7, 1, 0 }
   0xd   : > { %p2196_p8 = pneg %p2594_p7  ;;  %p2422_p10 = scmp.ne.s32.totalorder %s2720_s1, %s2421_s27 }
   0xe   : > { %p2428_p0 = scmp.lt.u32.totalorder %s2421_s27, %s2720_s1 }
   0xf   : > { %p2602_p9 = pnand %p2723_p6, %p2196_p8 }
  0x11   : > { %p2423_p11 = pneg %p2602_p9 }
  0x13   : > { %p2424_p12 = pnand %p2423_p11, %p2422_p10 }
  0x15   : > { %p2425_p13 = pneg %p2424_p12 }
  0x17   : > { %p2430_p1 = pnand %p2428_p0, %p2425_p13 }
  0x19   : > { %2433 = shalt.err (!%p2430_p1)
}
  0x1a   : > { %s2434_s5 = scalar_lea.vmem %s126_s23, 16384  ;;  %p2442_p8 = scmp.lt.s32.totalorder %s126_s23, %s126_s23 }
  0x1b   : > { %p2435_p2 = scmp.ne.s32.totalorder %s126_s23, %s2434_s5  ;;  %p2443_p6 = scmp.lt.s32.totalorder %s2434_s5, %s2434_s5 }
  0x1d   : > { %p2437_p3 = pnand %p2435_p2, %p2423_p11  ;;  %p2444_p4 = por %p2443_p6, %p2442_p8 }
  0x1f   : > { %p2438_p5 = pneg %p2437_p3 }
  0x21   : > { %p2445_p7 = pnand %p2444_p4, %p2438_p5 }
  0x23   : > { %2448 = shalt.err (!%p2445_p7)
}
  0x24   : > { %s2542_s6 = smov 64   ;;  %s2543_s7 = smov 4  }
  0x25   : > { %2199 = dma.hbm_to_vmem [thread:$0]  (!%p2602_p9), %s2720_s1, 16384, %s126_s23, [#allocation3], %s2542_s6, %s2542_s6, %s2543_s7  }
  0x26   : > { %p2728_p10 = scmp.ne.s32.totalorder %s2726_s21, 0 }
  0x27   : > { %p2729_p12 = scmp.eq.s32.totalorder (!%p2728_p10), %s2577_s15, 0 }
  0x28   : > { %164 = sbr.rel (%p2728_p10) target bundleno = 449 (0x1c1), region = 32 }
  0x2f   : > { %2494 = dma.done.wait (%p2729_p12), [#allocation3], 16384   ;;  %p2730_p11 = pmov %p2729_p12 }
  0x30   : > { %v2293_v0 = vld [vmem:[#allocation2 + $0x40] sm:$0xff]   ;;  %v2297_v4 = vld [vmem:[#allocation2 + $0x48] sm:$0xff]   ;;  %v2301_v8 = vld [vmem:[#allocation2 + $0x50] sm:$0xff]   ;;  %s2629_s10 = sshll.u32 %s2577_s15, 1  ;;  %s190_s24 = sand.u32 1, %s2499_s12  }
  0x31   : > { %2496 = vsyncadd (%p2730_p11), [#allocation3], 4294950912  ;;  %v2294_v1 = vld [vmem:[#allocation2 + $0xc0] sm:$0xff]   ;;  %2016 = vmatprep.subr.bf16.mxu0 %v2293_v0  ;;  %v2298_v5 = vld [vmem:[#allocation2 + $0xc8] sm:$0xff]   ;;  %p199_p4 = scmp.lt.s32.totalorder %s2629_s10, 2  ;;  %s1862_s25 = sshll.u32 %s190_s24, 4 }
  0x32   : > { %v2295_v2 = vld [vmem:[#allocation2] sm:$0xff]   ;;  %2038 = vmatprep.subr.bf16.mxu1 %v2294_v1  ;;  %v2299_v6 = vld [vmem:[#allocation2 + $0x8] sm:$0xff]   ;;  %v2302_v9 = vld [vmem:[#allocation2 + $0xd0] sm:$0xff]   ;;  %s2674_s26 = scalar_lea.vmem [#allocation4], %s1862_s25   ;;  %p2731_p6 = scmp.ne.s32.totalorder %s2725_s20, 0 }
  0x33   : > { %v2296_v3 = vld [vmem:[#allocation2 + $0x80] sm:$0xff]   ;;  %2017 = vmatpush3.bf16.msra.mxu0 %v2295_v2  ;;  %v2300_v7 = vld [vmem:[#allocation2 + $0x88] sm:$0xff]   ;;  %v2303_v10 = vld [vmem:[#allocation2 + $0x10] sm:$0xff]   ;;  %s200_s11 = scalar_select %p199_p4, %s2629_s10, 2 }
  0x34   : > { %2039 = vmatpush3.bf16.msra.mxu1 %v2296_v3  ;;  %2018 = vmatprep.subr.bf16.mxu0 %v2297_v4  ;;  %v2304_v11 = vld [vmem:[#allocation2 + $0x90] sm:$0xff]   ;;  %v2305_v12 = vld [vmem:[#allocation2 + $0x58] sm:$0xff]   ;;  %v2309_v16 = vld [vmem:[#allocation2 + $0x60] sm:$0xff]   ;;  %s1633_s12 = ssub.s32 (%p2731_p6), 3, %s2629_s10  ;;  %s2013_s27 = sshll.u32 (%p2731_p6), %s2577_s15, 4 }
  0x35   : > { %2040 = vmatprep.subr.bf16.mxu1 %v2298_v5  ;;  %v2306_v13 = vld [vmem:[#allocation2 + $0xd8] sm:$0xff]   ;;  %v2310_v17 = vld [vmem:[#allocation2 + $0xe0] sm:$0xff]   ;;  %v2313_v20 = vld [vmem:[#allocation2 + $0x68] sm:$0xff]   ;;  %s2012_s14 = sshll.u32 %s200_s11, 7  ;;  %p1634_p7 = scmp.lt.s32.totalorder (%p2731_p6), %s1633_s12, 2 }
  0x36   : > { %v2307_v14 = vld [vmem:[#allocation2 + $0x18] sm:$0xff]   ;;  %v2311_v18 = vld [vmem:[#allocation2 + $0x20] sm:$0xff]   ;;  %v2314_v21 = vld [vmem:[#allocation2 + $0xe8] sm:$0xff]   ;;  %s2636_s21 = scalar_lea.vmem %s2719_s0, %s2012_s14  ;;  %s2685_s30 = scalar_lea.vmem (%p2731_p6), %s2722_s3, %s2013_s27  }
  0x37   : > { %2019 = vmatpush3.bf16.msra.mxu0 %v2299_v6  ;;  %v2308_v15 = vld [vmem:[#allocation2 + $0x98] sm:$0xff]   ;;  %v2312_v19 = vld [vmem:[#allocation2 + $0xa0] sm:$0xff]   ;;  %v2315_v22 = vld [vmem:[#allocation2 + $0x28] sm:$0xff]  }
  0x38   : > { %2041 = vmatpush3.bf16.msra.mxu1 %v2300_v7  ;;  %2020 = vmatprep.subr.bf16.mxu0 %v2301_v8  ;;  %v2316_v23 = vld [vmem:[#allocation2 + $0xa8] sm:$0xff]   ;;  %v2317_v24 = vld [vmem:[#allocation2 + $0x70] sm:$0xff]   ;;  %v2321_v28 = vld [vmem:[#allocation2 + $0x78] sm:$0xff]  }
  0x39   : > { %2042 = vmatprep.subr.bf16.mxu1 %v2302_v9  ;;  %v2318_v25 = vld [vmem:[#allocation2 + $0xf0] sm:$0xff]   ;;  %v2322_v29 = vld [vmem:[#allocation2 + $0xf8] sm:$0xff]   ;;  %v217_v32 = vld [vmem:[%s2636_s21 + $0x8] sm:$0xff] }
  0x3a   : > { %v2319_v26 = vld [vmem:[#allocation2 + $0x30] sm:$0xff]   ;;  %v2323_v30 = vld [vmem:[#allocation2 + $0x38] sm:$0xff]   ;;  %v233_v33 = vld [vmem:[%s2636_s21 + $0x88] sm:$0xff] }
  0x3b   : > { %2021 = vmatpush3.bf16.msra.mxu0 %v2303_v10  ;;  %v2320_v27 = vld [vmem:[#allocation2 + $0xb0] sm:$0xff]   ;;  %v2324_v31 = vld [vmem:[#allocation2 + $0xb8] sm:$0xff]   ;;  %v249_v35 = vpack.c.bf16 %v233_v33, %v217_v32  ;;  %v216_v37 = vld [vmem:[%s2636_s21] sm:$0xff] }
  0x3c   : > { %2043 = vmatpush3.bf16.msra.mxu1 %v2304_v11  ;;  %2022 = vmatprep.subr.bf16.mxu0 %v2305_v12  ;;  %v219_v34 = vld [vmem:[%s2636_s21 + $0x18] sm:$0xff]  ;;  %v232_v38 = vld [vmem:[%s2636_s21 + $0x80] sm:$0xff]  ;;  %v218_v41 = vld [vmem:[%s2636_s21 + $0x10] sm:$0xff] }
  0x3d   : > { %2044 = vmatprep.subr.bf16.mxu1 %v2306_v13  ;;  %v235_v36 = vld [vmem:[%s2636_s21 + $0x98] sm:$0xff]  ;;  %v248_v40 = vpack.c.bf16 %v232_v38, %v216_v37  ;;  %v234_v42 = vld [vmem:[%s2636_s21 + $0x90] sm:$0xff]  ;;  %1327 = vmatprep.mubr.bf16.mxu0 %v249_v35  ;;  %v2325_v44 = vld [vmem:[#allocation2 + $0x140] sm:$0xff]  }
  0x3e   : > { %v251_v39 = vpack.c.bf16 %v235_v36, %v219_v34  ;;  %v250_v43 = vpack.c.bf16 %v234_v42, %v218_v41  ;;  %v2326_v45 = vld [vmem:[#allocation2 + $0x1c0] sm:$0xff]   ;;  %v2329_v48 = vld [vmem:[#allocation2 + $0x148] sm:$0xff]   ;;  %v2333_v52 = vld [vmem:[#allocation2 + $0x150] sm:$0xff]  }
  0x3f   : > { %2023 = vmatpush3.bf16.msra.mxu0 %v2307_v14  ;;  %v2327_v46 = vld [vmem:[#allocation2 + $0x100] sm:$0xff]   ;;  %v2330_v49 = vld [vmem:[#allocation2 + $0x1c8] sm:$0xff]   ;;  %v2334_v53 = vld [vmem:[#allocation2 + $0x1d0] sm:$0xff]  }
  0x40   : > { %2045 = vmatpush3.bf16.msra.mxu1 %v2308_v15  ;;  %2024 = vmatprep.subr.bf16.mxu0 %v2309_v16  ;;  %v2328_v47 = vld [vmem:[#allocation2 + $0x180] sm:$0xff]   ;;  %v2331_v50 = vld [vmem:[#allocation2 + $0x108] sm:$0xff]   ;;  %v2335_v54 = vld [vmem:[#allocation2 + $0x110] sm:$0xff]  }
  0x41   : > { %2046 = vmatprep.subr.bf16.mxu1 %v2310_v17  ;;  %1368 = vmatprep.mubr.bf16.mxu1 %v251_v39  ;;  %v2332_v51 = vld [vmem:[#allocation2 + $0x188] sm:$0xff]   ;;  %v2336_v55 = vld [vmem:[#allocation2 + $0x190] sm:$0xff]   ;;  %v2337_v56 = vld [vmem:[#allocation2 + $0x158] sm:$0xff]  }
  0x42   : > { %v2338_v57 = vld [vmem:[#allocation2 + $0x1d8] sm:$0xff]   ;;  %v2341_v60 = vld [vmem:[#allocation2 + $0x160] sm:$0xff]   ;;  %v2345_v0 = vld [vmem:[#allocation2 + $0x168] sm:$0xff]  }
  0x43   : > { %2025 = vmatpush3.bf16.msra.mxu0 %v2311_v18  ;;  %v2339_v58 = vld [vmem:[#allocation2 + $0x118] sm:$0xff]   ;;  %v2342_v61 = vld [vmem:[#allocation2 + $0x1e0] sm:$0xff]   ;;  %v2346_v1 = vld [vmem:[#allocation2 + $0x1e8] sm:$0xff]  }
  0x44   : > { %2047 = vmatpush3.bf16.msra.mxu1 %v2312_v19  ;;  %2026 = vmatprep.subr.bf16.mxu0 %v2313_v20  ;;  %v2340_v59 = vld [vmem:[#allocation2 + $0x198] sm:$0xff]   ;;  %v2343_v62 = vld [vmem:[#allocation2 + $0x120] sm:$0xff]   ;;  %v2347_v2 = vld [vmem:[#allocation2 + $0x128] sm:$0xff]  }
  0x45   : > { %2048 = vmatprep.subr.bf16.mxu1 %v2314_v21  ;;  %v2344_v63 = vld [vmem:[#allocation2 + $0x1a0] sm:$0xff]   ;;  %v2348_v3 = vld [vmem:[#allocation2 + $0x1a8] sm:$0xff]   ;;  %v2349_v4 = vld [vmem:[#allocation2 + $0x170] sm:$0xff]  }
  0x46   : > { %v2350_v5 = vld [vmem:[#allocation2 + $0x1f0] sm:$0xff]   ;;  %v2353_v8 = vld [vmem:[#allocation2 + $0x178] sm:$0xff]   ;;  %v221_v12 = vld [vmem:[%s2636_s21 + $0x28] sm:$0xff] }
  0x47   : > { %2027 = vmatpush3.bf16.msra.mxu0 %v2315_v22  ;;  %v2351_v6 = vld [vmem:[#allocation2 + $0x130] sm:$0xff]   ;;  %v2354_v9 = vld [vmem:[#allocation2 + $0x1f8] sm:$0xff]   ;;  %v237_v13 = vld [vmem:[%s2636_s21 + $0xa8] sm:$0xff] }
  0x48   : > { %2049 = vmatpush3.bf16.msra.mxu1 %v2316_v23  ;;  %2028 = vmatprep.subr.bf16.mxu0 %v2317_v24  ;;  %v2352_v7 = vld [vmem:[#allocation2 + $0x1b0] sm:$0xff]   ;;  %v2355_v10 = vld [vmem:[#allocation2 + $0x138] sm:$0xff]   ;;  %v253_v16 = vpack.c.bf16 %v237_v13, %v221_v12  ;;  %v220_v18 = vld [vmem:[%s2636_s21 + $0x20] sm:$0xff] }
  0x49   : > { %2050 = vmatprep.subr.bf16.mxu1 %v2318_v25  ;;  %v2356_v11 = vld [vmem:[#allocation2 + $0x1b8] sm:$0xff]   ;;  %v236_v19 = vld [vmem:[%s2636_s21 + $0xa0] sm:$0xff]  ;;  %v222_v20 = vld [vmem:[%s2636_s21 + $0x30] sm:$0xff] }
  0x4a   : > { %v223_v14 = vld [vmem:[%s2636_s21 + $0x38] sm:$0xff]  ;;  %v252_v21 = vpack.c.bf16 %v236_v19, %v220_v18  ;;  %v238_v22 = vld [vmem:[%s2636_s21 + $0xb0] sm:$0xff]  ;;  %v2357_v24 = vld [vmem:[#allocation2 + $0x240] sm:$0xff]  }
  0x4b   : > { %2029 = vmatpush3.bf16.msra.mxu0 %v2319_v26  ;;  %v239_v15 = vld [vmem:[%s2636_s21 + $0xb8] sm:$0xff]  ;;  %v254_v23 = vpack.c.bf16 %v238_v22, %v222_v20  ;;  %v2358_v25 = vld [vmem:[#allocation2 + $0x2c0] sm:$0xff]   ;;  %v2365_v32 = vld [vmem:[#allocation2 + $0x250] sm:$0xff]  }
  0x4c   : > { %2051 = vmatpush3.bf16.msra.mxu1 %v2320_v27  ;;  %2030 = vmatprep.subr.bf16.mxu0 %v2321_v28  ;;  %v255_v17 = vpack.c.bf16 %v239_v15, %v223_v14  ;;  %v2359_v26 = vld [vmem:[#allocation2 + $0x200] sm:$0xff]   ;;  %v2361_v28 = vld [vmem:[#allocation2 + $0x248] sm:$0xff]   ;;  %v2366_v33 = vld [vmem:[#allocation2 + $0x2d0] sm:$0xff]  }
  0x4d   : > { %2052 = vmatprep.subr.bf16.mxu1 %v2322_v29  ;;  %v2360_v27 = vld [vmem:[#allocation2 + $0x280] sm:$0xff]   ;;  %v2362_v29 = vld [vmem:[#allocation2 + $0x2c8] sm:$0xff]   ;;  %v2367_v34 = vld [vmem:[#allocation2 + $0x210] sm:$0xff]  }
  0x4e   : > { %v2368_v35 = vld [vmem:[#allocation2 + $0x290] sm:$0xff]   ;;  %v2369_v36 = vld [vmem:[#allocation2 + $0x258] sm:$0xff]   ;;  %v2374_v41 = vld [vmem:[#allocation2 + $0x2e0] sm:$0xff]  }
  0x4f   : > { %2031 = vmatpush3.bf16.msra.mxu0 %v2323_v30  ;;  %v2363_v30 = vld [vmem:[#allocation2 + $0x208] sm:$0xff]   ;;  %v2370_v37 = vld [vmem:[#allocation2 + $0x2d8] sm:$0xff]   ;;  %v2375_v42 = vld [vmem:[#allocation2 + $0x220] sm:$0xff]  }
  0x50   : > { %2053 = vmatpush3.bf16.msra.mxu1 %v2324_v31  ;;  %2060 = vmatprep.subr.bf16.mxu0 %v2325_v44  ;;  %v2364_v31 = vld [vmem:[#allocation2 + $0x288] sm:$0xff]   ;;  %v2371_v38 = vld [vmem:[#allocation2 + $0x218] sm:$0xff]   ;;  %v2397_v12 = vld [vmem:[#allocation2 + $0x350] sm:$0xff]  }
  0x51   : > { %2082 = vmatprep.subr.bf16.mxu1 %v2326_v45  ;;  %v2372_v39 = vld [vmem:[#allocation2 + $0x298] sm:$0xff]   ;;  %v2377_v44 = vld [vmem:[#allocation2 + $0x268] sm:$0xff]   ;;  %v2398_v13 = vld [vmem:[#allocation2 + $0x3d0] sm:$0xff]  }
  0x52   : > { %1328 = vmatmul.mubr.bf16.vlgmr.msra.gmra.mrb[0].mxu0 %v248_v40  ;;  %v2373_v40 = vld [vmem:[#allocation2 + $0x260] sm:$0xff]   ;;  %v2378_v45 = vld [vmem:[#allocation2 + $0x2e8] sm:$0xff]   ;;  %v2399_v14 = vld [vmem:[#allocation2 + $0x310] sm:$0xff]  }
  0x53   : > { %1369 = vmatmul.mubr.bf16.vlgmr.msra.gmra.mrb[0].mxu1 %v250_v43  ;;  %2061 = vmatpush3.bf16.msra.mxu0 %v2327_v46  ;;  %v2376_v43 = vld [vmem:[#allocation2 + $0x2a0] sm:$0xff]   ;;  %v2379_v46 = vld [vmem:[#allocation2 + $0x228] sm:$0xff]   ;;  %v2400_v15 = vld [vmem:[#allocation2 + $0x390] sm:$0xff]  }
  0x54   : > { %2083 = vmatpush3.bf16.msra.mxu1 %v2328_v47  ;;  %2062 = vmatprep.subr.bf16.mxu0 %v2329_v48  ;;  %v2380_v47 = vld [vmem:[#allocation2 + $0x2a8] sm:$0xff]   ;;  %v2381_v48 = vld [vmem:[#allocation2 + $0x270] sm:$0xff]   ;;  %v2403_v18 = vld [vmem:[#allocation2 + $0x318] sm:$0xff]  }
  0x55   : > { %2084 = vmatprep.subr.bf16.mxu1 %v2330_v49  ;;  %1409 = vmatprep.mubr.bf16.mxu0 %v253_v16  ;;  %v2382_v49 = vld [vmem:[#allocation2 + $0x2f0] sm:$0xff]   ;;  %v2401_v16 = vld [vmem:[#allocation2 + $0x358] sm:$0xff]   ;;  %v2405_v20 = vld [vmem:[#allocation2 + $0x360] sm:$0xff]  }
  0x56   : > { %1450 = vmatprep.mubr.bf16.mxu1 %v255_v17  ;;  %v2402_v17 = vld [vmem:[#allocation2 + $0x3d8] sm:$0xff]   ;;  %v2407_v22 = vld [vmem:[#allocation2 + $0x320] sm:$0xff]  }
  0x57   : > { %2063 = vmatpush3.bf16.msra.mxu0 %v2331_v50  ;;  %v2383_v50 = vld [vmem:[#allocation2 + $0x230] sm:$0xff]   ;;  %v2404_v19 = vld [vmem:[#allocation2 + $0x398] sm:$0xff]  }
  0x58   : > { %2085 = vmatpush3.bf16.msra.mxu1 %v2332_v51  ;;  %2064 = vmatprep.subr.bf16.mxu0 %v2333_v52  ;;  %v2384_v51 = vld [vmem:[#allocation2 + $0x2b0] sm:$0xff]   ;;  %v2385_v52 = vld [vmem:[#allocation2 + $0x278] sm:$0xff]  }
  0x59   : > { %2086 = vmatprep.subr.bf16.mxu1 %v2334_v53  ;;  %v2386_v53 = vld [vmem:[#allocation2 + $0x2f8] sm:$0xff]  }
  0x5b   : > { %2065 = vmatpush3.bf16.msra.mxu0 %v2335_v54  ;;  %v2387_v54 = vld [vmem:[#allocation2 + $0x238] sm:$0xff]  }
  0x5c   : > { %2087 = vmatpush3.bf16.msra.mxu1 %v2336_v55  ;;  %2066 = vmatprep.subr.bf16.mxu0 %v2337_v56  ;;  %v2388_v55 = vld [vmem:[#allocation2 + $0x2b8] sm:$0xff]   ;;  %v225_v56 = vld [vmem:[%s2636_s21 + $0x48] sm:$0xff] }
  0x5d   : > { %2088 = vmatprep.subr.bf16.mxu1 %v2338_v57  ;;  %v241_v57 = vld [vmem:[%s2636_s21 + $0xc8] sm:$0xff] }
  0x5f   : > { %2067 = vmatpush3.bf16.msra.mxu0 %v2339_v58  ;;  %v257_v58 = vpack.c.bf16 %v241_v57, %v225_v56 }
  0x60   : > { %2089 = vmatpush3.bf16.msra.mxu1 %v2340_v59  ;;  %2068 = vmatprep.subr.bf16.mxu0 %v2341_v60  ;;  %v227_v59 = vld [vmem:[%s2636_s21 + $0x58] sm:$0xff] }
  0x61   : > { %2090 = vmatprep.subr.bf16.mxu1 %v2342_v61  ;;  %v243_v60 = vld [vmem:[%s2636_s21 + $0xd8] sm:$0xff]  ;;  %v224_v61 = vld [vmem:[%s2636_s21 + $0x40] sm:$0xff] }
  0x63   : > { %2069 = vmatpush3.bf16.msra.mxu0 %v2343_v62  ;;  %v259_v62 = vpack.c.bf16 %v243_v60, %v227_v59 }
  0x64   : > { %2091 = vmatpush3.bf16.msra.mxu1 %v2344_v63  ;;  %2070 = vmatprep.subr.bf16.mxu0 %v2345_v0  ;;  %v240_v63 = vld [vmem:[%s2636_s21 + $0xc0] sm:$0xff]  ;;  %v226_v0 = vld [vmem:[%s2636_s21 + $0x50] sm:$0xff] }
  0x65   : > { %2092 = vmatprep.subr.bf16.mxu1 %v2346_v1  ;;  %v242_v1 = vld [vmem:[%s2636_s21 + $0xd0] sm:$0xff] }
  0x67   : > { %2071 = vmatpush3.bf16.msra.mxu0 %v2347_v2  ;;  %v256_v2 = vpack.c.bf16 %v240_v63, %v224_v61 }
  0x68   : > { %2093 = vmatpush3.bf16.msra.mxu1 %v2348_v3  ;;  %2072 = vmatprep.subr.bf16.mxu0 %v2349_v4  ;;  %v258_v3 = vpack.c.bf16 %v242_v1, %v226_v0  ;;  %v2389_v4 = vld [vmem:[#allocation2 + $0x340] sm:$0xff]  }
  0x69   : > { %2094 = vmatprep.subr.bf16.mxu1 %v2350_v5  ;;  %v2390_v5 = vld [vmem:[#allocation2 + $0x3c0] sm:$0xff]  }
  0x6b   : > { %2073 = vmatpush3.bf16.msra.mxu0 %v2351_v6  ;;  %v2391_v6 = vld [vmem:[#allocation2 + $0x300] sm:$0xff]  }
  0x6c   : > { %2095 = vmatpush3.bf16.msra.mxu1 %v2352_v7  ;;  %2074 = vmatprep.subr.bf16.mxu0 %v2353_v8  ;;  %v2392_v7 = vld [vmem:[#allocation2 + $0x380] sm:$0xff]   ;;  %v2393_v8 = vld [vmem:[#allocation2 + $0x348] sm:$0xff]  }
  0x6d   : > { %2096 = vmatprep.subr.bf16.mxu1 %v2354_v9  ;;  %v2394_v9 = vld [vmem:[#allocation2 + $0x3c8] sm:$0xff]  }
  0x6f   : > { %2075 = vmatpush3.bf16.msra.mxu0 %v2355_v10  ;;  %v2395_v10 = vld [vmem:[#allocation2 + $0x308] sm:$0xff]  }
  0x70   : > { %2097 = vmatpush3.bf16.msra.mxu1 %v2356_v11  ;;  %2104 = vmatprep.subr.bf16.mxu0 %v2357_v24  ;;  %v2396_v11 = vld [vmem:[#allocation2 + $0x388] sm:$0xff]  }
  0x71   : > { %2126 = vmatprep.subr.bf16.mxu1 %v2358_v25  ;;  %v2409_v24 = vld [vmem:[#allocation2 + $0x368] sm:$0xff]  }
  0x72   : > { %1410 = vmatmul.mubr.bf16.vlgmr.msra.gmra.mrb[4].mxu0 %v252_v21  ;;  %v2406_v21 = vld [vmem:[#allocation2 + $0x3e0] sm:$0xff]   ;;  %v2410_v25 = vld [vmem:[#allocation2 + $0x3e8] sm:$0xff]  }
  0x73   : > { %1451 = vmatmul.mubr.bf16.vlgmr.msra.gmra.mrb[4].mxu1 %v254_v23  ;;  %2105 = vmatpush3.bf16.msra.mxu0 %v2359_v26  ;;  %v2408_v23 = vld [vmem:[#allocation2 + $0x3a0] sm:$0xff]   ;;  %v2411_v26 = vld [vmem:[#allocation2 + $0x328] sm:$0xff]  }
  0x74   : > { %2127 = vmatpush3.bf16.msra.mxu1 %v2360_v27  ;;  %2106 = vmatprep.subr.bf16.mxu0 %v2361_v28  ;;  %v2412_v27 = vld [vmem:[#allocation2 + $0x3a8] sm:$0xff]   ;;  %v2413_v28 = vld [vmem:[#allocation2 + $0x370] sm:$0xff]  }
  0x75   : > { %2128 = vmatprep.subr.bf16.mxu1 %v2362_v29  ;;  %1491 = vmatprep.mubr.bf16.mxu0 %v257_v58  ;;  %v2414_v29 = vld [vmem:[#allocation2 + $0x3f0] sm:$0xff]  }
  0x76   : > { %1532 = vmatprep.mubr.bf16.mxu1 %v259_v62 }
  0x77   : > { %2107 = vmatpush3.bf16.msra.mxu0 %v2363_v30  ;;  %v2415_v30 = vld [vmem:[#allocation2 + $0x330] sm:$0xff]  }
  0x78   : > { %2129 = vmatpush3.bf16.msra.mxu1 %v2364_v31  ;;  %2108 = vmatprep.subr.bf16.mxu0 %v2365_v32  ;;  %v2416_v31 = vld [vmem:[#allocation2 + $0x3b0] sm:$0xff]   ;;  %v2417_v32 = vld [vmem:[#allocation2 + $0x378] sm:$0xff]  }
  0x79   : > { %2130 = vmatprep.subr.bf16.mxu1 %v2366_v33  ;;  %v2418_v33 = vld [vmem:[#allocation2 + $0x3f8] sm:$0xff]  }
  0x7b   : > { %2109 = vmatpush3.bf16.msra.mxu0 %v2367_v34  ;;  %v2419_v34 = vld [vmem:[#allocation2 + $0x338] sm:$0xff]  }
  0x7c   : > { %2131 = vmatpush3.bf16.msra.mxu1 %v2368_v35  ;;  %2110 = vmatprep.subr.bf16.mxu0 %v2369_v36  ;;  %v2420_v35 = vld [vmem:[#allocation2 + $0x3b8] sm:$0xff]   ;;  %v229_v36 = vld [vmem:[%s2636_s21 + $0x68] sm:$0xff] }
  0x7d   : > { %2132 = vmatprep.subr.bf16.mxu1 %v2370_v37  ;;  %v245_v37 = vld [vmem:[%s2636_s21 + $0xe8] sm:$0xff] }
  0x7f   : > { %2111 = vmatpush3.bf16.msra.mxu0 %v2371_v38  ;;  %v231_v38 = vld [vmem:[%s2636_s21 + $0x78] sm:$0xff] }
  0x80   : > { %2133 = vmatpush3.bf16.msra.mxu1 %v2372_v39  ;;  %2112 = vmatprep.subr.bf16.mxu0 %v2373_v40  ;;  %v261_v39 = vpack.c.bf16 %v245_v37, %v229_v36  ;;  %v247_v40 = vld [vmem:[%s2636_s21 + $0xf8] sm:$0xff] }
  0x81   : > { %2134 = vmatprep.subr.bf16.mxu1 %v2374_v41  ;;  %v228_v41 = vld [vmem:[%s2636_s21 + $0x60] sm:$0xff] }
  0x83   : > { %2113 = vmatpush3.bf16.msra.mxu0 %v2375_v42  ;;  %v244_v42 = vld [vmem:[%s2636_s21 + $0xe0] sm:$0xff] }
  0x84   : > { %2135 = vmatpush3.bf16.msra.mxu1 %v2376_v43  ;;  %2114 = vmatprep.subr.bf16.mxu0 %v2377_v44  ;;  %v263_v43 = vpack.c.bf16 %v247_v40, %v231_v38  ;;  %v260_v44 = vpack.c.bf16 %v244_v42, %v228_v41 }
  0x85   : > { %2136 = vmatprep.subr.bf16.mxu1 %v2378_v45  ;;  %v230_v45 = vld [vmem:[%s2636_s21 + $0x70] sm:$0xff] }
  0x87   : > { %2115 = vmatpush3.bf16.msra.mxu0 %v2379_v46  ;;  %v246_v46 = vld [vmem:[%s2636_s21 + $0xf0] sm:$0xff] }
  0x88   : > { %2137 = vmatpush3.bf16.msra.mxu1 %v2380_v47  ;;  %2116 = vmatprep.subr.bf16.mxu0 %v2381_v48  ;;  %v262_v47 = vpack.c.bf16 %v246_v46, %v230_v45 }
  0x89   : > { %2138 = vmatprep.subr.bf16.mxu1 %v2382_v49 }
  0x8b   : > { %2117 = vmatpush3.bf16.msra.mxu0 %v2383_v50  ;;  %v1866_v50 = vld [vmem:[%s2721_s2] ss:$0 sm:$0xff] }
  0x8c   : > { %2139 = vmatpush3.bf16.msra.mxu1 %v2384_v51  ;;  %2118 = vmatprep.subr.bf16.mxu0 %v2385_v52 }
  0x8d   : > { %2140 = vmatprep.subr.bf16.mxu1 %v2386_v53 }
  0x8f   : > { %2119 = vmatpush3.bf16.msra.mxu0 %v2387_v54 }
  0x90   : > { %2141 = vmatpush3.bf16.msra.mxu1 %v2388_v55  ;;  %2148 = vmatprep.subr.bf16.mxu0 %v2389_v4 }
  0x91   : > { %2170 = vmatprep.subr.bf16.mxu1 %v2390_v5 }
  0x92   : > { %1492 = vmatmul.mubr.bf16.vlgmr.msra.gmra.mrb[8].mxu0 %v256_v2 }
  0x93   : > { %1533 = vmatmul.mubr.bf16.vlgmr.msra.gmra.mrb[8].mxu1 %v258_v3  ;;  %2149 = vmatpush3.bf16.msra.mxu0 %v2391_v6 }
  0x94   : > { %2171 = vmatpush3.bf16.msra.mxu1 %v2392_v7  ;;  %2150 = vmatprep.subr.bf16.mxu0 %v2393_v8 }
  0x95   : > { %2172 = vmatprep.subr.bf16.mxu1 %v2394_v9  ;;  %1573 = vmatprep.mubr.bf16.mxu0 %v261_v39 }
  0x96   : > { %1614 = vmatprep.mubr.bf16.mxu1 %v263_v43 }
  0x97   : > { %2151 = vmatpush3.bf16.msra.mxu0 %v2395_v10 }
  0x98   : > { %2173 = vmatpush3.bf16.msra.mxu1 %v2396_v11  ;;  %2152 = vmatprep.subr.bf16.mxu0 %v2397_v12 }
  0x99   : > { %2174 = vmatprep.subr.bf16.mxu1 %v2398_v13 }
  0x9b   : > { %2153 = vmatpush3.bf16.msra.mxu0 %v2399_v14 }
  0x9c   : > { %2175 = vmatpush3.bf16.msra.mxu1 %v2400_v15  ;;  %2154 = vmatprep.subr.bf16.mxu0 %v2401_v16 }
  0x9d   : > { %2176 = vmatprep.subr.bf16.mxu1 %v2402_v17 }
  0x9f   : > { %2155 = vmatpush3.bf16.msra.mxu0 %v2403_v18 }
  0xa0   : > { %2177 = vmatpush3.bf16.msra.mxu1 %v2404_v19  ;;  %2156 = vmatprep.subr.bf16.mxu0 %v2405_v20 }
  0xa1   : > { %2178 = vmatprep.subr.bf16.mxu1 %v2406_v21 }
  0xa3   : > { %2157 = vmatpush3.bf16.msra.mxu0 %v2407_v22 }
  0xa4   : > { %2179 = vmatpush3.bf16.msra.mxu1 %v2408_v23  ;;  %2158 = vmatprep.subr.bf16.mxu0 %v2409_v24 }
  0xa5   : > { %2180 = vmatprep.subr.bf16.mxu1 %v2410_v25 }
  0xa7   : > { %2159 = vmatpush3.bf16.msra.mxu0 %v2411_v26 }
  0xa8   : > { %2181 = vmatpush3.bf16.msra.mxu1 %v2412_v27  ;;  %2160 = vmatprep.subr.bf16.mxu0 %v2413_v28 }
  0xa9   : > { %2182 = vmatprep.subr.bf16.mxu1 %v2414_v29 }
  0xab   : > { %2161 = vmatpush3.bf16.msra.mxu0 %v2415_v30 }
  0xac   : > { %2183 = vmatpush3.bf16.msra.mxu1 %v2416_v31  ;;  %2162 = vmatprep.subr.bf16.mxu0 %v2417_v32 }
  0xad   : > { %2184 = vmatprep.subr.bf16.mxu1 %v2418_v33 }
  0xaf   : > { %2163 = vmatpush3.bf16.msra.mxu0 %v2419_v34 }
  0xb0   : > { %2185 = vmatpush3.bf16.msra.mxu1 %v2420_v35 }
  0xb2   : > { %1574 = vmatmul.mubr.bf16.vlgmr.msra.gmra.mrb[12].mxu0 %v260_v44 }
  0xb3   : > { %1615 = vmatmul.mubr.bf16.vlgmr.msra.gmra.mrb[12].mxu1 %v262_v47 }
 0x125   : > { %v2032_v48 = vpop.f32.mrb[0].mxu0 }
 0x126   : > { %v2054_v49 = vpop.f32.mrb[0].mxu1  ;;  %v2033_v51 = vpop.f32.mrb[1].mxu0 }
 0x127   : > { %v2034_v52 = vadd.f32 %v2033_v51, %v2032_v48  ;;  %v2055_v53 = vpop.f32.mrb[1].mxu1  ;;  %v2035_v54 = vpop.f32.mrb[2].mxu0 }
 0x128   : > { %v2056_v55 = vadd.f32 %v2055_v53, %v2054_v49  ;;  %v2057_v56 = vpop.f32.mrb[2].mxu1  ;;  %v2036_v57 = vpop.f32.mrb[3].mxu0 }
 0x129   : > { %v1330_v58 = vadd.f32 %v2034_v52, %v1866_v50  ;;  %v2037_v59 = vadd.f32 %v2036_v57, %v2035_v54  ;;  %v2058_v60 = vpop.f32.mrb[3].mxu1 }
 0x12a   : > { %v2059_v61 = vadd.f32 %v2058_v60, %v2057_v56 }
 0x12b   : > { %v1371_v62 = vadd.f32 %v2056_v55, %v1330_v58  ;;  %v1333_v63 = vadd.f32 %v2037_v59, %v1866_v50 }
 0x12d   : > { %v1374_v0 = vadd.f32 %v2059_v61, %v1333_v63 }
 0x145   : > { %v2076_v1 = vpop.f32.mrb[4].mxu0 }
 0x146   : > { %v2098_v2 = vpop.f32.mrb[4].mxu1  ;;  %v2077_v3 = vpop.f32.mrb[5].mxu0 }
 0x147   : > { %v2078_v4 = vadd.f32 %v2077_v3, %v2076_v1  ;;  %v2099_v5 = vpop.f32.mrb[5].mxu1  ;;  %v2079_v6 = vpop.f32.mrb[6].mxu0 }
 0x148   : > { %v2100_v7 = vadd.f32 %v2099_v5, %v2098_v2  ;;  %v2101_v8 = vpop.f32.mrb[6].mxu1  ;;  %v2080_v9 = vpop.f32.mrb[7].mxu0 }
 0x149   : > { %v1412_v10 = vadd.f32 %v2078_v4, %v1371_v62  ;;  %v2081_v11 = vadd.f32 %v2080_v9, %v2079_v6  ;;  %v2102_v12 = vpop.f32.mrb[7].mxu1 }
 0x14a   : > { %v2103_v13 = vadd.f32 %v2102_v12, %v2101_v8 }
 0x14b   : > { %v1453_v14 = vadd.f32 %v2100_v7, %v1412_v10  ;;  %v1415_v15 = vadd.f32 %v2081_v11, %v1374_v0 }
 0x14d   : > { %v1456_v16 = vadd.f32 %v2103_v13, %v1415_v15 }
 0x165   : > { %v2120_v17 = vpop.f32.mrb[8].mxu0 }
 0x166   : > { %v2142_v18 = vpop.f32.mrb[8].mxu1  ;;  %v2121_v19 = vpop.f32.mrb[9].mxu0 }
 0x167   : > { %v2143_v20 = vpop.f32.mrb[9].mxu1  ;;  %v2122_v21 = vadd.f32 %v2121_v19, %v2120_v17  ;;  %v2123_v23 = vpop.f32.mrb[10].mxu0 }
 0x168   : > { %v2144_v22 = vadd.f32 %v2143_v20, %v2142_v18  ;;  %v2145_v24 = vpop.f32.mrb[10].mxu1  ;;  %v2124_v25 = vpop.f32.mrb[11].mxu0 }
 0x169   : > { %v2146_v26 = vpop.f32.mrb[11].mxu1  ;;  %v1494_v27 = vadd.f32 %v2122_v21, %v1453_v14  ;;  %v2125_v28 = vadd.f32 %v2124_v25, %v2123_v23 }
 0x16a   : > { %v2147_v29 = vadd.f32 %v2146_v26, %v2145_v24 }
 0x16b   : > { %v1535_v30 = vadd.f32 %v2144_v22, %v1494_v27  ;;  %v1497_v31 = vadd.f32 %v2125_v28, %v1456_v16 }
 0x16d   : > { %v1538_v32 = vadd.f32 %v2147_v29, %v1497_v31 }
 0x185   : > { %v2164_v33 = vpop.f32.mrb[12].mxu0 }
 0x186   : > { %v2186_v34 = vpop.f32.mrb[12].mxu1  ;;  %v2165_v35 = vpop.f32.mrb[13].mxu0 }
 0x187   : > { %v2166_v36 = vadd.f32 %v2165_v35, %v2164_v33  ;;  %v2187_v37 = vpop.f32.mrb[13].mxu1  ;;  %v2167_v38 = vpop.f32.mrb[14].mxu0 }
 0x188   : > { %v2188_v39 = vadd.f32 %v2187_v37, %v2186_v34  ;;  %v2189_v40 = vpop.f32.mrb[14].mxu1  ;;  %v2168_v41 = vpop.f32.mrb[15].mxu0 }
 0x189   : > { %v1576_v42 = vadd.f32 %v2166_v36, %v1535_v30  ;;  %v2169_v43 = vadd.f32 %v2168_v41, %v2167_v38  ;;  %v2190_v44 = vpop.f32.mrb[15].mxu1  ;;  %1631 = sbr.rel (!%p2731_p6) target bundleno = 449 (0x1c1), region = 40 }
 0x18a   : > { %v2191_v45 = vadd.f32 %v2190_v44, %v2189_v40 }
 0x18b   : > { %v1617_v46 = vadd.f32 %v2188_v39, %v1576_v42  ;;  %v1579_v47 = vadd.f32 %v2169_v43, %v1538_v32 }
 0x18d   : > { %1623 = vst [vmem:[%s2674_s26] sm:$0xff] %v1617_v46  ;;  %v1620_v48 = vadd.f32 %v2191_v45, %v1579_v47 }
 0x18f   : > { %1624 = vst [vmem:[%s2674_s26 + $0x8] sm:$0xff] %v1620_v48 }
 0x190   : > { %s2736_s12 = smov (!%p1634_p7, %s1633_s12), 2 }
 0x191   : > { %s1997_s4 = sshll.u32 %s2736_s12, 7 }
 0x192   : > { %p2000_p9 = scmp.eq.s32.totalorder %s1997_s4, 0 }
 0x193   : > { %s2691_s5 = sshrl.u32 (!%p2000_p9), %s2736_s12, 1 }
 0x194   : > { %1642 = sbr.rel (%p2000_p9) target bundleno = 449 (0x1c1), region = 44  ;;  %p2001_p13 = scmp.le.s32.totalorder (!%p2000_p9), %s2691_s5, 0 }
 0x19b   : > { %1803 = sbr.rel (%p2001_p13) target bundleno = 428 (0x1ac), region = 121  ;;  %s2509_s15 = smov (!%p2001_p13), %s2685_s30  }
 0x19c   : > { %s2513_s20 = smov (!%p2001_p13), %s2674_s26   ;;  %s2517_s6 = smov (!%p2001_p13), 0  }
 0x19d   : > { %s2521_s7 = smov (!%p2001_p13), 0  }
 0x1a2 LB: >> { %v1706_v49 = vld [vmem:[%s2515_s20] sm:$0xff]  ;;  %v1708_v50 = vld [vmem:[%s2515_s20 + $0x8] sm:$0xff]  ;;  %s1710_s8 = sadd.s32 1, %s2519_s6  ;;  %s1700_s7 = sadd.s32 1, %s2523_s7   ;;  %s2523_s7 = sphi %s2521_s7, %s1700_s7   ;;  %s2519_s6 = sphi %s2517_s6, %s2518_s6   ;;  %s2515_s20 = sphi %s2513_s20, %s1715_s20   ;;  %s2511_s15 = sphi %s2509_s15, %s1716_s15  }
 0x1a3   : >> { %1707 = vst [vmem:[%s2511_s15] sm:$0xff] %v1706_v49  ;;  %1709 = vst [vmem:[%s2511_s15 + $0x8] sm:$0xff] %v1708_v50  ;;  %p1711_p0 = scmp.ge.s32.totalorder %s1710_s8, %s2691_s5  ;;  %p1699_p1 = scmp.ge.s32.totalorder %s1700_s7, %s2691_s5 }
 0x1a5   : >> { %s2738_s8 = smov (%p1711_p0, %s1710_s8), 0  ;;  %1702 = sbr.rel (!%p1699_p1) target bundleno = 418 (0x1a2), region = 127 }
 0x1a6   : >> { %s2002_s9 = sshll.u32 %s2738_s8, 4  ;;  %s2518_s6 = smov %s2738_s8  }
 0x1a7   : >> { %s1715_s20 = scalar_lea.vmem %s2674_s26, %s2002_s9 [#allocation4]   ;;  %s1716_s15 = scalar_lea.vmem %s2685_s30, %s2002_s9  }
 0x1ac PF: > { %s2701_s10 = sand.u32 1, %s2736_s12   ;;  %s2014_s11 = sshll.u32 %s2691_s5, 4 }
 0x1ad   : > { %s1721_s14 = scalar_lea.vmem %s2674_s26, %s2014_s11 [#allocation4]   ;;  %s1723_s17 = scalar_lea.vmem %s2685_s30, %s2014_s11  }
 0x1ae   : > { %p2007_p2 = scmp.le.s32.totalorder %s2701_s10, 0 }
 0x1af   : > { %s2525_s18 = smov (!%p2007_p2), %s1723_s17   ;;  %s2529_s21 = smov (!%p2007_p2), %s1721_s14  }
 0x1b0   : > { %1817 = sbr.rel (%p2007_p2) target bundleno = 449 (0x1c1), region = 132  ;;  %s2533_s22 = smov (!%p2007_p2), 0  }
 0x1b1   : > { %s2537_s23 = smov (!%p2007_p2), 0  }
 0x1b7 LB: >> { %v1733_v51 = vld [vmem:[%s2531_s21] sm:$0xff]  ;;  %s1735_s24 = sadd.s32 1, %s2535_s22  ;;  %s1727_s23 = sadd.s32 1, %s2539_s23   ;;  %s2539_s23 = sphi %s2537_s23, %s1727_s23   ;;  %s2535_s22 = sphi %s2533_s22, %s2534_s22   ;;  %s2531_s21 = sphi %s2529_s21, %s1740_s21   ;;  %s2527_s18 = sphi %s2525_s18, %s1741_s18  }
 0x1b8   : >> { %1734 = vst [vmem:[%s2527_s18] sm:$0xff] %v1733_v51  ;;  %p1736_p3 = scmp.ge.s32.totalorder %s1735_s24, %s2701_s10  ;;  %p1726_p5 = scmp.ge.s32.totalorder %s1727_s23, %s2701_s10 }
 0x1ba   : >> { %s2740_s24 = smov (%p1736_p3, %s1735_s24), 0  ;;  %1729 = sbr.rel (!%p1726_p5) target bundleno = 439 (0x1b7), region = 138 }
 0x1bb   : >> { %s2008_s25 = sshll.u32 %s2740_s24, 3  ;;  %s2534_s22 = smov %s2740_s24  }
 0x1bc   : >> { %s1740_s21 = scalar_lea.vmem %s1721_s14, %s2008_s25 [#allocation4]   ;;  %s1741_s18 = scalar_lea.vmem %s1723_s17, %s2008_s25  }
 0x1c1 PF: > { %p11_p8 = scmp.ge.s32.totalorder %s2579_s16, 4   ;;  %s2732_s12 = smov %s2503_s13 }
 0x1c2   : > { %s2733_s13 = smov %s2587_s19  ;;  %s2734_s14 = smov %s2579_s16 }
 0x1c3   :  { %13 = sbr.rel (!%p11_p8) target bundleno = 2 (0x2), region = 149 }
 0x1ca   :  { %1757 = vsyncpa [#allocation3], 1 }
 0x1cb   :  { %1759 = vsyncpa [#allocation3 + $0x1], 1 }

</bundles_post_ra>
